<compile_context>
chip_gen: v6e
topology: v6e:2x2x1
jax: 0.10.0
libtpu: 0.0.40
codegen_flags: <defaults>
</compile_context>

<pallas_src>
import jax
import jax.numpy as jnp
from jax.experimental import pallas as pl
from jax.experimental.pallas import tpu as pltpu

LN_EPS = 1e-5  # torch.nn.LayerNorm default eps


def _fused_stats_matmul_kernel(x_ref, w_ref, raw_ref, s_ref, q_ref):
    """Single HBM read of x: raw bf16 classifier matmul + per-lane LayerNorm partials."""
    x = x_ref[...]
    xf = x.astype(jnp.float32)

    # Raw (un-normalized) logits on the MXU in bf16 with f32 accumulation; the LayerNorm
    # affine is applied algebraically in the wrapper epilogue.
    raw_ref[...] = jnp.dot(x.astype(jnp.bfloat16), w_ref[...],
                           preferred_element_type=jnp.float32)

    # Per-(sublane, lane) partial sum / sum-of-squares. The reshape only regroups whole
    # 8-row vreg bands (layout-preserving), so the axis-0 reductions are plain VALU vreg
    # adds and the (8, H) stores are fully aligned/unmasked. Stats stay in f32.
    tm, h = xf.shape
    xg = xf.reshape(tm // 8, 8, h)
    s_ref[...] = jnp.sum(xg, axis=0)
    q_ref[...] = jnp.sum(xg * xg, axis=0)


def _round_up(x, m):
    return (x + m - 1) // m * m


def _pick_row_tile(bs, target=1024):
    """Row tile: multiple of 8, <= target (1024 keeps per-step VMEM ~9.6 MiB at H=1024,
    inside even v5e's 16 MiB scoped default; on v7x/v6e 2048 + vmem_limit_bytes is an
    option). Prefer an exact divisor of bs in (target//2, target] to avoid pad rows;
    otherwise fall back to `target` and let the wrapper zero-pad (stats mask pad rows)."""
    bs8 = _round_up(bs, 8)
    if bs8 <= target:
        return bs8
    for cand in range(target, target // 2, -8):
        if bs % cand == 0:
            return cand
    return target


@jax.jit
def bert_tagger_head(features, w, b):
    """features: [B, S, H] encoder hidden states, w: [H, L], b: [1, L] -> logits [B, S, L]."""
    B, S, H = features.shape
    L = w.shape[1]
    BS = B * S
    Lp = pl.cdiv(L, 128) * 128          # lane-dense matmul output width (unmasked vst)
    tm = _pick_row_tile(BS)
    BS_pad = _round_up(BS, tm)
    nt = BS_pad // tm

    x2d = features.reshape(BS, H)
    if BS_pad != BS:
        # Zero rows contribute nothing to the (sum, sumsq) partials and are excluded from
        # the variance combine below via per-bucket counts; their matmul rows are sliced off.
        x2d = jnp.pad(x2d, ((0, BS_pad - BS), (0, 0)))

    # Classifier weight padded to 128 lanes and cast to bf16 for the MXU.
    w_pad = jnp.pad(w.astype(jnp.float32), ((0, 0), (0, Lp - L))).astype(jnp.bfloat16)

    # Pass 1 (dominant cost): one streaming read of x -> raw matmul + stats partials.
    # Per-step VMEM at tm=1024, H=1024: 2*(tm*H*4) + 2*(H*Lp*2) + 2*(tm*Lp*4) + partials
    # ~= 9.6 MiB -> fits every generation's scoped-VMEM default, no override needed.
    raw, s_part, q_part = pl.pallas_call(
        _fused_stats_matmul_kernel,
        out_shape=(
            jax.ShapeDtypeStruct((BS_pad, Lp), jnp.float32),
            jax.ShapeDtypeStruct((nt, 8, H), jnp.float32),
            jax.ShapeDtypeStruct((nt, 8, H), jnp.float32),
        ),
        grid=(nt,),
        in_specs=[
            pl.BlockSpec((tm, H), lambda i: (i, 0)),    # activation row tile (read ONCE)
            pl.BlockSpec((H, Lp), lambda i: (0, 0)),    # bf16 classifier weight (resident)
        ],
        out_specs=(
            pl.BlockSpec((tm, Lp), lambda i: (i, 0)),          # raw logits, lane-dense
            pl.BlockSpec((None, 8, H), lambda i: (i, 0, 0)),   # per-tile per-lane sums
            pl.BlockSpec((None, 8, H), lambda i: (i, 0, 0)),   # per-tile per-lane sumsqs
        ),
        compiler_params=pltpu.CompilerParams(
            # TODO(synk): on v7x, verify the parallel axis shards across both TensorCores;
            # if not, switch this axis to pltpu.CORE_PARALLEL (keep nt even).
            dimension_semantics=("parallel",),
        ),
    )(x2d, w_pad)

    # --- Global LayerNorm statistics from the per-bucket partials (tiny arrays) ---
    # Bucket (tile t, sublane a, lane c) holds one element per real row {t*tm + 8*i + a};
    # pad rows are zeros in s/q and are removed from the counts, so the combine is exact.
    n = float(BS * H)
    rows_per_bucket = tm // 8
    t_idx = jnp.arange(nt, dtype=jnp.int32)[:, None]
    a_idx = jnp.arange(8, dtype=jnp.int32)[None, :]
    first_row = t_idx * tm + a_idx                                        # (nt, 8)
    cnt = jnp.clip((BS - first_row + 7) // 8, 0, rows_per_bucket)         # real rows/bucket
    m_g = cnt.astype(jnp.float32)[:, :, None]                             # (nt, 8, 1)

    mean = jnp.sum(s_part) / n
    mu_g = s_part / jnp.maximum(m_g, 1.0)
    m2_g = q_part - s_part * mu_g                 # group M2; empty buckets contribute 0
    var = (jnp.sum(m2_g) + jnp.sum(m_g * (mu_g - mean) ** 2)) / n
    inv = jax.lax.rsqrt(var + LN_EPS)

    # --- Fused XLA epilogue: fold LayerNorm (gamma=1, beta=0) + bias into one affine ---
    # slice (drop pad rows / pad lanes) + scale + shift + reshape fuse into a single small
    # op over [BS, L]; no second Pallas launch, no padded round trip.
    colsum_w = jnp.sum(w_pad.astype(jnp.float32)[:, :L], axis=0)          # (L,)
    shift = b.reshape(1, L).astype(jnp.float32) - inv * mean * colsum_w[None, :]
    logits = raw[:BS, :L] * inv + shift

    # nn.Dropout in eval mode is identity; the module returns logit_samples[0].
    return logits.reshape(B, S, L)


def _reference(features, w, b):
    x = features.astype(jnp.float32)
    mean = jnp.mean(x)
    var = jnp.mean((x - mean) ** 2)
    xn = (x - mean) * jax.lax.rsqrt(var + LN_EPS)
    return jnp.einsum("bsh,hl->bsl", xn, w) + b.reshape(1, 1, -1)


if __name__ == "__main__":
    # Small shapes consistent with the module's forward:
    #   batch=2, max_seq_length=8, config.hidden_size=32, num_labels=4
    B, S, H, L = 2, 8, 32, 4

    key = jax.random.PRNGKey(0)
    k_feat, k_w, k_b = jax.random.split(key, 3)

    # "BERT encoder output" hidden states (see TODO(synk) above).
    features = jax.random.normal(k_feat, (B, S, H), dtype=jnp.float32)

    # Deterministic classifier params (torch nn.Linear-style uniform init).
    bound = 1.0 / (H ** 0.5)
    w = jax.random.uniform(k_w, (H, L), minval=-bound, maxval=bound, dtype=jnp.float32)
    b = jax.random.uniform(k_b, (1, L), minval=-bound, maxval=bound, dtype=jnp.float32)

    logits = bert_tagger_head(features, w, b)
    logits = jax.block_until_ready(logits)

    ref = _reference(features, w, b)
    assert logits.shape == (B, S, L)
    # MXU inputs are bf16 (f32 accumulate), so the f32 check tolerance is loosened.
    assert jnp.allclose(logits, ref, rtol=2e-2, atol=2e-2), "mismatch vs pure-JAX reference"

    print("KERNEL_OK")
</pallas_src>

<mosaic_0001>
module attributes {stable_mosaic.version = 11 : i64} {
  func.func @_fused_stats_matmul_kernel(%arg0: i32, %arg1: memref<16x32xf32, #tpu.memory_space<vmem>>, %arg2: memref<32x128xbf16, #tpu.memory_space<vmem>>, %arg3: memref<16x128xf32, #tpu.memory_space<vmem>>, %arg4: memref<1x8x32xf32, #tpu.memory_space<vmem>>, %arg5: memref<1x8x32xf32, #tpu.memory_space<vmem>>) attributes {dimension_semantics = [#tpu.dimension_semantics<parallel>], iteration_bounds = array<i64: 1>, scalar_prefetch = 0 : i64, scratch_operands = 0 : i64, tpu.core_type = #tpu.core_type<tc>, window_params = [{transform_indices = @transform_0, window_bounds = array<i64: 16, 32>}, {pipeline_mode = #tpu.pipeline_mode<synchronous>, transform_indices = @transform_1, window_bounds = array<i64: 32, 128>}, {transform_indices = @transform_2, window_bounds = array<i64: 16, 128>}, {transform_indices = @transform_3, window_bounds = array<i64: 1, 8, 32>}, {transform_indices = @transform_4, window_bounds = array<i64: 1, 8, 32>}]} {
    %c0 = arith.constant 0 : index
    %c0_0 = arith.constant 0 : index
    %0 = vector.load %arg1[%c0, %c0_0] : memref<16x32xf32, #tpu.memory_space<vmem>>, vector<16x32xf32>
    %1 = arith.truncf %0 : vector<16x32xf32> to vector<16x32xbf16>
    %c0_1 = arith.constant 0 : index
    %c0_2 = arith.constant 0 : index
    %2 = vector.load %arg2[%c0_1, %c0_2] : memref<32x128xbf16, #tpu.memory_space<vmem>>, vector<32x128xbf16>
    %cst = arith.constant dense<0.000000e+00> : vector<16x128xf32>
    %3 = tpu.matmul %1, %2, %cst {dimension_numbers = #tpu.dot_dimension_numbers<[1], [0], [0], [1], [0, 0, 1, 1], [], []>} : vector<16x32xbf16>, vector<32x128xbf16>, vector<16x128xf32> -> vector<16x128xf32>
    %c0_3 = arith.constant 0 : index
    %c0_4 = arith.constant 0 : index
    %4 = vector.load %arg3[%c0_3, %c0_4] : memref<16x128xf32, #tpu.memory_space<vmem>>, vector<16x128xf32>
    tpu.vector_store %arg3[%c0_3, %c0_4], %3 {strides = array<i32>} : memref<16x128xf32, #tpu.memory_space<vmem>>, vector<16x128xf32>,
    %5 = vector.shape_cast %0 : vector<16x32xf32> to vector<2x8x32xf32>
    %cst_5 = arith.constant dense<0.000000e+00> : vector<8x32xf32>
    %6 = vector.multi_reduction <add>, %5, %cst_5 [0] : vector<2x8x32xf32> to vector<8x32xf32>
    %c0_6 = arith.constant 0 : index
    %c0_7 = arith.constant 0 : index
    %c0_8 = arith.constant 0 : index
    %7 = vector.load %arg4[%c0_6, %c0_7, %c0_8] : memref<1x8x32xf32, #tpu.memory_space<vmem>>, vector<1x8x32xf32>
    %8 = vector.shape_cast %7 : vector<1x8x32xf32> to vector<8x32xf32>
    %9 = vector.shape_cast %6 : vector<8x32xf32> to vector<1x8x32xf32>
    tpu.vector_store %arg4[%c0_6, %c0_7, %c0_8], %9 {strides = array<i32>} : memref<1x8x32xf32, #tpu.memory_space<vmem>>, vector<1x8x32xf32>,
    %10 = arith.mulf %5, %5 : vector<2x8x32xf32>
    %cst_9 = arith.constant dense<0.000000e+00> : vector<8x32xf32>
    %11 = vector.multi_reduction <add>, %10, %cst_9 [0] : vector<2x8x32xf32> to vector<8x32xf32>
    %c0_10 = arith.constant 0 : index
    %c0_11 = arith.constant 0 : index
    %c0_12 = arith.constant 0 : index
    %12 = vector.load %arg5[%c0_10, %c0_11, %c0_12] : memref<1x8x32xf32, #tpu.memory_space<vmem>>, vector<1x8x32xf32>
    %13 = vector.shape_cast %12 : vector<1x8x32xf32> to vector<8x32xf32>
    %14 = vector.shape_cast %11 : vector<8x32xf32> to vector<1x8x32xf32>
    tpu.vector_store %arg5[%c0_10, %c0_11, %c0_12], %14 {strides = array<i32>} : memref<1x8x32xf32, #tpu.memory_space<vmem>>, vector<1x8x32xf32>,
    return
  }
  func.func @transform_0(%arg0: i32) -> (i32, i32) {
    %c0_i32 = arith.constant 0 : i32
    %c0_i32_0 = arith.constant 0 : i32
    return %arg0, %c0_i32 : i32, i32
  }
  func.func @transform_1(%arg0: i32) -> (i32, i32) {
    %c0_i32 = arith.constant 0 : i32
    %c0_i32_0 = arith.constant 0 : i32
    %c0_i32_1 = arith.constant 0 : i32
    return %c0_i32, %c0_i32_0 : i32, i32
  }
  func.func @transform_2(%arg0: i32) -> (i32, i32) {
    %c0_i32 = arith.constant 0 : i32
    %c0_i32_0 = arith.constant 0 : i32
    return %arg0, %c0_i32 : i32, i32
  }
  func.func @transform_3(%arg0: i32) -> (i32, i32, i32) {
    %c0_i32 = arith.constant 0 : i32
    %c0_i32_0 = arith.constant 0 : i32
    %c0_i32_1 = arith.constant 0 : i32
    return %arg0, %c0_i32, %c0_i32_0 : i32, i32, i32
  }
  func.func @transform_4(%arg0: i32) -> (i32, i32, i32) {
    %c0_i32 = arith.constant 0 : i32
    %c0_i32_0 = arith.constant 0 : i32
    %c0_i32_1 = arith.constant 0 : i32
    return %arg0, %c0_i32, %c0_i32_0 : i32, i32, i32
  }
}

</mosaic_0001>

<bundles_post_ra>
// kernel: bert_tagger_head.1
= control target key start
LH: loop header
LB: loop body
LE: loop exit
PB: predicated region body
PF: predicated region fallthrough
CT: control target
= control target key end

     0   :  { %v121_v0 = vmov 0.0   ;;  %vm122_vm0 = vmmov 0   ;;  %vm34_vm1 = vcmask 261120   ;;  %s179_s1 = inlined_call_operand.vmem [shape: bf16[32,128], index: 1, kind: input, shape index: {}]   ;;  %s180_s0 = inlined_call_operand.vmem [shape: f32[16,32], index: 0, kind: input, shape index: {}]   ;;  %s181_s3 = inlined_call_operand.vmem [shape: f32[1,8,32], index: 3, kind: output, shape index: {1}]   ;;  %s182_s4 = inlined_call_operand.vmem [shape: f32[1,8,32], index: 4, kind: output, shape index: {2}]   ;;  %s183_s2 = inlined_call_operand.vmem [shape: f32[16,128], index: 2, kind: output, shape index: {0}]  }
   0x1   :  { %109 = vmatprep.subr.bf16.mxu0 %v121_v0  ;;  %v119_v1 = vld [vmem:[%s179_s1 + $0x8] sm:$0xff]   ;;  %113 = vmatprep.mubr.msk.bf16.mxu0 %vm122_vm0, %v121_v0  ;;  %v120_v2 = vld [vmem:[%s179_s1] sm:$0xff]  }
   0x2   :  { %110 = vmatpush3.bf16.msra.mxu0 %v119_v1  ;;  %v15_v3 = vld [vmem:[%s180_s0] sm:$0xff]  ;;  %v16_v4 = vld [vmem:[%s180_s0 + $0x8] sm:$0xff] }
   0x3   :  { %111 = vmatprep.subr.bf16.mxu0 %v121_v0  ;;  %v81_v5 = vsel %vm34_vm1, %v15_v3, 0.0  ;;  %v82_v6 = vsel %vm34_vm1, %v16_v4, 0.0  ;;  %v85_v7 = vmul.f32 %v15_v3, %v15_v3  ;;  %v86_v9 = vmul.f32 %v16_v4, %v16_v4 }
   0x4   :  { %v83_v8 = vadd.f32 %v82_v6, %v81_v5  ;;  %v17_v10 = vpack.c.bf16 %v16_v4, %v15_v3 }
   0x5   :  { %v87_v11 = vsel %vm34_vm1, %v85_v7, 0.0  ;;  %v88_v12 = vsel %vm34_vm1, %v86_v9, 0.0 }
   0x6   :  { %112 = vmatpush3.bf16.msra.mxu0 %v120_v2  ;;  %84 = vst.msk [vmem:[%s181_s3] sm:$0xff] %vm34_vm1, %v83_v8  ;;  %v89_v13 = vadd.f32 %v88_v12, %v87_v11 }
   0x8   :  { %90 = vst.msk [vmem:[%s182_s4] sm:$0xff] %vm34_vm1, %v89_v13 }
   0x9   :  { %114 = vmatmul.mubr.msk.bf16.vlgmr.msra.gmra.mxu0 %vm34_vm1, %v17_v10 }
  0xc9   :  { %v72_v14 = vpop.f32.mrf.mxu0 }
  0xca   :  { %79 = vst [vmem:[%s183_s2] sm:$0xff] %v72_v14 }
  0xcb   :  { %v115_v15 = vpop.f32.mrf.mxu0 }
  0xcd   :  { %v75_v16 = vpop.f32.mrf.mxu0 }
  0xce   :  { %80 = vst [vmem:[%s183_s2 + $0x8] sm:$0xff] %v75_v16 }
  0xcf   :  { %v116_v17 = vpop.f32.mrf.mxu0 }

</bundles_post_ra>
